<compile_context>
chip_gen: v6e
topology: v6e:2x2x1
jax: 0.10.0
libtpu: 0.0.40
codegen_flags: <defaults>
</compile_context>

<pallas_src>
import jax
import jax.numpy as jnp
from jax.experimental import pallas as pl
from jax.experimental.pallas import tpu as pltpu


def _leaky_relu(t):
    # nn.LeakyReLU() default negative_slope = 0.01
    return jnp.where(t > 0, t, 0.01 * t)


def _round_up(n, m):
    return ((n + m - 1) // m) * m


def _choose_tile(B):
    """Batch-tile size: multiple of 16 (bf16 sublanes); >=2 tiles when the batch allows
    (so v7x's two TensorCores both get work); capped at 512 to amortize grid-step cost."""
    MIN_TILE = 16
    CAP = 512
    if B < 2 * MIN_TILE:
        return _round_up(max(B, 1), MIN_TILE)
    half = _round_up((B + 1) // 2, MIN_TILE)
    return min(CAP, half)


def cvae_kernel(
    # batch-tiled data
    xy_ref,            # (TB, feat+class) bf16  -- [x | y], y in the trailing class lanes
    eps_ref,           # (TB, latent)     f32
    # encoder params (weights bf16, biases f32), VMEM-resident
    w1_ref, b1_ref,
    w2_ref, b2_ref,
    wh_ref, bh_ref,    # fused [mu | logvar] head
    # decoder params
    wd1z_ref, wd1y_ref, bd1_ref,   # decoder layer 1 split into z-part and y-part
    wd2_ref, bd2_ref,
    wd3_ref, bd3_ref,
    # packed output [x_rec | mu | logvar]
    out_ref,
):
    f32 = jnp.float32
    bf16 = jnp.bfloat16
    latent = eps_ref.shape[-1]
    feat = out_ref.shape[-1] - 2 * latent

    xy = xy_ref[...]                                 # already bf16

    # --- encoder: Linear(feat+class, hidden) -> LeakyReLU -> Linear(hidden, hidden) -> LeakyReLU
    h = jnp.dot(xy, w1_ref[...], preferred_element_type=f32) + b1_ref[...]
    h = _leaky_relu(h)
    h = jnp.dot(h.astype(bf16), w2_ref[...], preferred_element_type=f32) + b2_ref[...]
    h = _leaky_relu(h)

    # --- fused heads: one matmul producing [mu | logvar]
    heads = jnp.dot(h.astype(bf16), wh_ref[...], preferred_element_type=f32) + bh_ref[...]
    mu = heads[:, :latent]
    logvar = heads[:, latent:]

    # --- reparameterize: z = eps * exp(0.5 * logvar) + mu   (exp goes to the EUP, f32)
    z = eps_ref[...] * jnp.exp(0.5 * logvar) + mu

    # --- decoder layer 1: Linear(latent+class, hidden); y-conditioning done in-kernel.
    #     y is the trailing class_dim lanes of xy (no extra DMA stream needed).
    y = xy[:, feat:]
    d = (jnp.dot(z.astype(bf16), wd1z_ref[...], preferred_element_type=f32)
         + jnp.dot(y, wd1y_ref[...], preferred_element_type=f32)
         + bd1_ref[...])
    d = _leaky_relu(d)
    d = jnp.dot(d.astype(bf16), wd2_ref[...], preferred_element_type=f32) + bd2_ref[...]
    d = _leaky_relu(d)
    logit = jnp.dot(d.astype(bf16), wd3_ref[...], preferred_element_type=f32) + bd3_ref[...]
    x_rec = _leaky_relu(logit)   # `self.sigmoid` in the reference module is nn.LeakyReLU()

    # --- single lane-dense store: [x_rec | mu | logvar] == [x_rec | heads]
    out_ref[...] = jnp.concatenate([x_rec, heads], axis=-1)


def prepare_params(params):
    """One-time parameter preparation, hoisted out of the per-call forward path:
    bf16 casts of matmul weights, fused [mu|logvar] head, wd1 split into z/y parts."""
    bf16, f32 = jnp.bfloat16, jnp.float32
    latent = params["wmu"].shape[1]
    return dict(
        w1=params["w1"].astype(bf16), b1=params["b1"].astype(f32),
        w2=params["w2"].astype(bf16), b2=params["b2"].astype(f32),
        wh=jnp.concatenate([params["wmu"], params["wvar"]], axis=1).astype(bf16),
        bh=jnp.concatenate([params["bmu"], params["bvar"]], axis=1).astype(f32),
        wd1z=params["wd1"][:latent].astype(bf16),
        wd1y=params["wd1"][latent:].astype(bf16),
        bd1=params["bd1"].astype(f32),
        wd2=params["wd2"].astype(bf16), bd2=params["bd2"].astype(f32),
        wd3=params["wd3"].astype(bf16), bd3=params["bd3"].astype(f32),
    )


def conditional_vae_forward(x, y, eps, prep):
    """x: (B, feat), y: (B, class), eps: (B, latent) f32, prep from prepare_params().
    Returns (x_rec, mu, logvar)."""
    f32, bf16 = jnp.float32, jnp.bfloat16
    B, feat = x.shape
    class_dim = y.shape[1]
    latent = eps.shape[1]
    hidden = prep["w2"].shape[0]

    y = y.astype(f32)                                             # matches y.float()
    # Encoder input shipped as bf16: it is only ever used as a bf16 MXU LHS, and the
    # trailing class_dim lanes double as y for the decoder's conditioning in-kernel.
    xy = jnp.concatenate([x.astype(f32), y], axis=1).astype(bf16)
    eps = eps.astype(f32)

    TB = _choose_tile(B)
    B_pad = _round_up(B, TB)
    if B_pad != B:
        pad = ((0, B_pad - B), (0, 0))
        xy = jnp.pad(xy, pad)          # pad rows produce finite garbage, sliced off below
        eps = jnp.pad(eps, pad)
    grid = (B_pad // TB,)
    out_dim = feat + 2 * latent

    def batch_spec(d):
        return pl.BlockSpec((TB, d), lambda i: (i, 0))

    def resident_spec(arr):
        # same block every grid step -> stays VMEM-resident, not re-DMA'd
        return pl.BlockSpec(arr.shape, lambda i: (0, 0))

    in_specs = [
        batch_spec(feat + class_dim),   # xy (bf16)
        batch_spec(latent),             # eps (f32)
        resident_spec(prep["w1"]), resident_spec(prep["b1"]),
        resident_spec(prep["w2"]), resident_spec(prep["b2"]),
        resident_spec(prep["wh"]), resident_spec(prep["bh"]),
        resident_spec(prep["wd1z"]), resident_spec(prep["wd1y"]), resident_spec(prep["bd1"]),
        resident_spec(prep["wd2"]), resident_spec(prep["bd2"]),
        resident_spec(prep["wd3"]), resident_spec(prep["bd3"]),
    ]

    flops = 2 * B_pad * ((feat + class_dim) * hidden + hidden * hidden
                         + hidden * 2 * latent
                         + latent * hidden + class_dim * hidden
                         + hidden * hidden + hidden * feat)
    weight_bytes = 2 * (prep["w1"].size + prep["w2"].size + prep["wh"].size
                        + prep["wd1z"].size + prep["wd1y"].size
                        + prep["wd2"].size + prep["wd3"].size)
    bias_bytes = 4 * (prep["b1"].size + prep["b2"].size + prep["bh"].size
                      + prep["bd1"].size + prep["bd2"].size + prep["bd3"].size)
    bytes_accessed = (xy.size * 2 + eps.size * 4 + weight_bytes + bias_bytes
                      + B_pad * out_dim * 4)
    cost = pl.CostEstimate(flops=flops, transcendentals=B_pad * latent,
                           bytes_accessed=bytes_accessed)

    packed = pl.pallas_call(
        cvae_kernel,
        out_shape=jax.ShapeDtypeStruct((B_pad, out_dim), f32),
        grid=grid,
        in_specs=in_specs,
        out_specs=pl.BlockSpec((TB, out_dim), lambda i: (i, 0)),
        compiler_params=pltpu.CompilerParams(dimension_semantics=("parallel",)),
        cost_estimate=cost,
    )(xy, eps,
      prep["w1"], prep["b1"], prep["w2"], prep["b2"], prep["wh"], prep["bh"],
      prep["wd1z"], prep["wd1y"], prep["bd1"],
      prep["wd2"], prep["bd2"], prep["wd3"], prep["bd3"])

    x_rec = packed[:B, :feat]
    mu = packed[:B, feat:feat + latent]
    logvar = packed[:B, feat + latent:]
    return x_rec, mu, logvar


def cvae_reference(x, y, eps, params):
    """Plain-JAX reference with the same bf16-matmul / f32-accumulate precision policy."""
    def mm(a, w):
        return jnp.dot(a.astype(jnp.bfloat16), w.astype(jnp.bfloat16),
                       preferred_element_type=jnp.float32)

    y = y.astype(jnp.float32)
    xy = jnp.concatenate([x, y], axis=1)
    h = _leaky_relu(mm(xy, params["w1"]) + params["b1"])
    h = _leaky_relu(mm(h, params["w2"]) + params["b2"])
    mu = mm(h, params["wmu"]) + params["bmu"]
    logvar = mm(h, params["wvar"]) + params["bvar"]
    z = eps * jnp.exp(0.5 * logvar) + mu
    zy = jnp.concatenate([z, y], axis=1)
    d = _leaky_relu(mm(zy, params["wd1"]) + params["bd1"])
    d = _leaky_relu(mm(d, params["wd2"]) + params["bd2"])
    x_rec = _leaky_relu(mm(d, params["wd3"]) + params["bd3"])
    return x_rec, mu, logvar


def init_params(key, feat_dim, class_dim, hidden_dim, latent_dim):
    """Deterministic synthetic parameters mirroring the PyTorch layers (weights stored (in, out))."""
    def lin(k, fan_in, fan_out):
        kw, kb = jax.random.split(k)
        bound = fan_in ** -0.5
        w = jax.random.uniform(kw, (fan_in, fan_out), jnp.float32, -bound, bound)
        b = jax.random.uniform(kb, (1, fan_out), jnp.float32, -bound, bound)
        return w, b

    keys = jax.random.split(key, 7)
    w1, b1 = lin(keys[0], feat_dim + class_dim, hidden_dim)
    w2, b2 = lin(keys[1], hidden_dim, hidden_dim)
    wmu, bmu = lin(keys[2], hidden_dim, latent_dim)
    wvar, bvar = lin(keys[3], hidden_dim, latent_dim)
    wd1, bd1 = lin(keys[4], latent_dim + class_dim, hidden_dim)
    wd2, bd2 = lin(keys[5], hidden_dim, hidden_dim)
    wd3, bd3 = lin(keys[6], hidden_dim, feat_dim)
    return dict(w1=w1, b1=b1, w2=w2, b2=b2, wmu=wmu, bmu=bmu, wvar=wvar, bvar=bvar,
                wd1=wd1, bd1=bd1, wd2=wd2, bd2=bd2, wd3=wd3, bd3=bd3)


if __name__ == "__main__":
    # Small shapes consistent with the module (MNIST-ish CVAE, scaled down).
    B = 8
    feat_dim = 64
    class_dim = 8
    hidden_dim = 128
    latent_dim = 32

    root = jax.random.PRNGKey(0)
    k_params, k_x, k_y, k_eps = jax.random.split(root, 4)

    params = init_params(k_params, feat_dim, class_dim, hidden_dim, latent_dim)
    prep = prepare_params(params)   # one-time prep, outside the per-call forward path

    x = jax.random.normal(k_x, (B, feat_dim), jnp.float32)
    # one-hot class conditioning, converted to float (matches y.float() in forward)
    labels = jax.random.randint(k_y, (B,), 0, class_dim)
    y = jax.nn.one_hot(labels, class_dim, dtype=jnp.float32)
    # reparameterization noise (stands in for torch .normal_())
    # TODO(synk): torch.cuda.FloatTensor(...).normal_() has no in-kernel equivalent;
    # noise is drawn with jax.random outside the kernel.
    eps = jax.random.normal(k_eps, (B, latent_dim), jnp.float32)

    fwd = jax.jit(conditional_vae_forward)
    x_rec, mu, logvar = fwd(x, y, eps, prep)
    jax.block_until_ready((x_rec, mu, logvar))

    assert x_rec.shape == (B, feat_dim)
    assert mu.shape == (B, latent_dim)
    assert logvar.shape == (B, latent_dim)

    # correctness vs plain-JAX reference (same bf16/f32 precision policy)
    xr_ref, mu_ref, lv_ref = cvae_reference(x, y, eps, params)
    for got, want in ((x_rec, xr_ref), (mu, mu_ref), (logvar, lv_ref)):
        err = float(jnp.max(jnp.abs(got - want)))
        assert err < 5e-2, f"mismatch vs reference: max abs err {err}"

    print("KERNEL_OK")
</pallas_src>

<mosaic_0001>
module attributes {stable_mosaic.version = 11 : i64} {
  func.func @cvae_kernel(%arg0: i32, %arg1: memref<16x72xbf16, #tpu.memory_space<vmem>>, %arg2: memref<16x32xf32, #tpu.memory_space<vmem>>, %arg3: memref<72x128xbf16, #tpu.memory_space<vmem>>, %arg4: memref<1x128xf32, #tpu.memory_space<vmem>>, %arg5: memref<128x128xbf16, #tpu.memory_space<vmem>>, %arg6: memref<1x128xf32, #tpu.memory_space<vmem>>, %arg7: memref<128x64xbf16, #tpu.memory_space<vmem>>, %arg8: memref<1x64xf32, #tpu.memory_space<vmem>>, %arg9: memref<32x128xbf16, #tpu.memory_space<vmem>>, %arg10: memref<8x128xbf16, #tpu.memory_space<vmem>>, %arg11: memref<1x128xf32, #tpu.memory_space<vmem>>, %arg12: memref<128x128xbf16, #tpu.memory_space<vmem>>, %arg13: memref<1x128xf32, #tpu.memory_space<vmem>>, %arg14: memref<128x64xbf16, #tpu.memory_space<vmem>>, %arg15: memref<1x64xf32, #tpu.memory_space<vmem>>, %arg16: memref<16x128xf32, #tpu.memory_space<vmem>>) attributes {dimension_semantics = [#tpu.dimension_semantics<parallel>], iteration_bounds = array<i64: 1>, scalar_prefetch = 0 : i64, scratch_operands = 0 : i64, tpu.core_type = #tpu.core_type<tc>, window_params = [{transform_indices = @transform_0, window_bounds = array<i64: 16, 72>}, {transform_indices = @transform_1, window_bounds = array<i64: 16, 32>}, {pipeline_mode = #tpu.pipeline_mode<synchronous>, transform_indices = @transform_2, window_bounds = array<i64: 72, 128>}, {pipeline_mode = #tpu.pipeline_mode<synchronous>, transform_indices = @transform_3, window_bounds = array<i64: 1, 128>}, {pipeline_mode = #tpu.pipeline_mode<synchronous>, transform_indices = @transform_4, window_bounds = array<i64: 128, 128>}, {pipeline_mode = #tpu.pipeline_mode<synchronous>, transform_indices = @transform_5, window_bounds = array<i64: 1, 128>}, {pipeline_mode = #tpu.pipeline_mode<synchronous>, transform_indices = @transform_6, window_bounds = array<i64: 128, 64>}, {pipeline_mode = #tpu.pipeline_mode<synchronous>, transform_indices = @transform_7, window_bounds = array<i64: 1, 64>}, {pipeline_mode = #tpu.pipeline_mode<synchronous>, transform_indices = @transform_8, window_bounds = array<i64: 32, 128>}, {pipeline_mode = #tpu.pipeline_mode<synchronous>, transform_indices = @transform_9, window_bounds = array<i64: 8, 128>}, {pipeline_mode = #tpu.pipeline_mode<synchronous>, transform_indices = @transform_10, window_bounds = array<i64: 1, 128>}, {pipeline_mode = #tpu.pipeline_mode<synchronous>, transform_indices = @transform_11, window_bounds = array<i64: 128, 128>}, {pipeline_mode = #tpu.pipeline_mode<synchronous>, transform_indices = @transform_12, window_bounds = array<i64: 1, 128>}, {pipeline_mode = #tpu.pipeline_mode<synchronous>, transform_indices = @transform_13, window_bounds = array<i64: 128, 64>}, {pipeline_mode = #tpu.pipeline_mode<synchronous>, transform_indices = @transform_14, window_bounds = array<i64: 1, 64>}, {transform_indices = @transform_15, window_bounds = array<i64: 16, 128>}]} {
    %c0 = arith.constant 0 : index
    %c0_0 = arith.constant 0 : index
    %0 = vector.load %arg1[%c0, %c0_0] : memref<16x72xbf16, #tpu.memory_space<vmem>>, vector<16x72xbf16>
    %c0_1 = arith.constant 0 : index
    %c0_2 = arith.constant 0 : index
    %1 = vector.load %arg3[%c0_1, %c0_2] : memref<72x128xbf16, #tpu.memory_space<vmem>>, vector<72x128xbf16>
    %cst = arith.constant dense<0.000000e+00> : vector<16x128xf32>
    %2 = tpu.matmul %0, %1, %cst {dimension_numbers = #tpu.dot_dimension_numbers<[1], [0], [0], [1], [0, 0, 1, 1], [], []>} : vector<16x72xbf16>, vector<72x128xbf16>, vector<16x128xf32> -> vector<16x128xf32>
    %c0_3 = arith.constant 0 : index
    %c0_4 = arith.constant 0 : index
    %3 = vector.load %arg4[%c0_3, %c0_4] : memref<1x128xf32, #tpu.memory_space<vmem>>, vector<1x128xf32>
    %4 = vector.broadcast %3 : vector<1x128xf32> to vector<16x128xf32>
    %5 = arith.addf %2, %4 : vector<16x128xf32>
    %cst_5 = arith.constant 0.000000e+00 : f32
    %6 = vector.broadcast %cst_5 : f32 to vector<16x128xf32>
    %7 = arith.cmpf ogt, %5, %6 : vector<16x128xf32>
    %cst_6 = arith.constant 0.00999999977 : f32
    %8 = vector.broadcast %cst_6 : f32 to vector<16x128xf32>
    %9 = arith.mulf %8, %5 : vector<16x128xf32>
    %10 = arith.select %7, %5, %9 : vector<16x128xi1>, vector<16x128xf32>
    %11 = arith.truncf %10 : vector<16x128xf32> to vector<16x128xbf16>
    %c0_7 = arith.constant 0 : index
    %c0_8 = arith.constant 0 : index
    %12 = vector.load %arg5[%c0_7, %c0_8] : memref<128x128xbf16, #tpu.memory_space<vmem>>, vector<128x128xbf16>
    %cst_9 = arith.constant dense<0.000000e+00> : vector<16x128xf32>
    %13 = tpu.matmul %11, %12, %cst_9 {dimension_numbers = #tpu.dot_dimension_numbers<[1], [0], [0], [1], [0, 0, 1, 1], [], []>} : vector<16x128xbf16>, vector<128x128xbf16>, vector<16x128xf32> -> vector<16x128xf32>
    %c0_10 = arith.constant 0 : index
    %c0_11 = arith.constant 0 : index
    %14 = vector.load %arg6[%c0_10, %c0_11] : memref<1x128xf32, #tpu.memory_space<vmem>>, vector<1x128xf32>
    %15 = vector.broadcast %14 : vector<1x128xf32> to vector<16x128xf32>
    %16 = arith.addf %13, %15 : vector<16x128xf32>
    %cst_12 = arith.constant 0.000000e+00 : f32
    %17 = vector.broadcast %cst_12 : f32 to vector<16x128xf32>
    %18 = arith.cmpf ogt, %16, %17 : vector<16x128xf32>
    %cst_13 = arith.constant 0.00999999977 : f32
    %19 = vector.broadcast %cst_13 : f32 to vector<16x128xf32>
    %20 = arith.mulf %19, %16 : vector<16x128xf32>
    %21 = arith.select %18, %16, %20 : vector<16x128xi1>, vector<16x128xf32>
    %22 = arith.truncf %21 : vector<16x128xf32> to vector<16x128xbf16>
    %c0_14 = arith.constant 0 : index
    %c0_15 = arith.constant 0 : index
    %23 = vector.load %arg7[%c0_14, %c0_15] : memref<128x64xbf16, #tpu.memory_space<vmem>>, vector<128x64xbf16>
    %cst_16 = arith.constant dense<0.000000e+00> : vector<16x64xf32>
    %24 = tpu.matmul %22, %23, %cst_16 {dimension_numbers = #tpu.dot_dimension_numbers<[1], [0], [0], [1], [0, 0, 1, 1], [], []>} : vector<16x128xbf16>, vector<128x64xbf16>, vector<16x64xf32> -> vector<16x64xf32>
    %c0_17 = arith.constant 0 : index
    %c0_18 = arith.constant 0 : index
    %25 = vector.load %arg8[%c0_17, %c0_18] : memref<1x64xf32, #tpu.memory_space<vmem>>, vector<1x64xf32>
    %26 = vector.broadcast %25 : vector<1x64xf32> to vector<16x64xf32>
    %27 = arith.addf %24, %26 : vector<16x64xf32>
    %28 = vector.extract_strided_slice %27 {offsets = [0, 0], sizes = [16, 32], strides = [1, 1]} : vector<16x64xf32> to vector<16x32xf32>
    %29 = vector.extract_strided_slice %27 {offsets = [0, 32], sizes = [16, 32], strides = [1, 1]} : vector<16x64xf32> to vector<16x32xf32>
    %c0_19 = arith.constant 0 : index
    %c0_20 = arith.constant 0 : index
    %30 = vector.load %arg2[%c0_19, %c0_20] : memref<16x32xf32, #tpu.memory_space<vmem>>, vector<16x32xf32>
    %cst_21 = arith.constant 5.000000e-01 : f32
    %31 = vector.broadcast %cst_21 : f32 to vector<16x32xf32>
    %32 = arith.mulf %31, %29 : vector<16x32xf32>
    %33 = math.exp %32 : vector<16x32xf32>
    %34 = arith.mulf %30, %33 : vector<16x32xf32>
    %35 = arith.addf %34, %28 : vector<16x32xf32>
    %36 = vector.extract_strided_slice %0 {offsets = [0, 64], sizes = [16, 8], strides = [1, 1]} : vector<16x72xbf16> to vector<16x8xbf16>
    %37 = arith.truncf %35 : vector<16x32xf32> to vector<16x32xbf16>
    %c0_22 = arith.constant 0 : index
    %c0_23 = arith.constant 0 : index
    %38 = vector.load %arg9[%c0_22, %c0_23] : memref<32x128xbf16, #tpu.memory_space<vmem>>, vector<32x128xbf16>
    %cst_24 = arith.constant dense<0.000000e+00> : vector<16x128xf32>
    %39 = tpu.matmul %37, %38, %cst_24 {dimension_numbers = #tpu.dot_dimension_numbers<[1], [0], [0], [1], [0, 0, 1, 1], [], []>} : vector<16x32xbf16>, vector<32x128xbf16>, vector<16x128xf32> -> vector<16x128xf32>
    %c0_25 = arith.constant 0 : index
    %c0_26 = arith.constant 0 : index
    %40 = vector.load %arg10[%c0_25, %c0_26] : memref<8x128xbf16, #tpu.memory_space<vmem>>, vector<8x128xbf16>
    %cst_27 = arith.constant dense<0.000000e+00> : vector<16x128xf32>
    %41 = tpu.matmul %36, %40, %cst_27 {dimension_numbers = #tpu.dot_dimension_numbers<[1], [0], [0], [1], [0, 0, 1, 1], [], []>} : vector<16x8xbf16>, vector<8x128xbf16>, vector<16x128xf32> -> vector<16x128xf32>
    %42 = arith.addf %39, %41 : vector<16x128xf32>
    %c0_28 = arith.constant 0 : index
    %c0_29 = arith.constant 0 : index
    %43 = vector.load %arg11[%c0_28, %c0_29] : memref<1x128xf32, #tpu.memory_space<vmem>>, vector<1x128xf32>
    %44 = vector.broadcast %43 : vector<1x128xf32> to vector<16x128xf32>
    %45 = arith.addf %42, %44 : vector<16x128xf32>
    %cst_30 = arith.constant 0.000000e+00 : f32
    %46 = vector.broadcast %cst_30 : f32 to vector<16x128xf32>
    %47 = arith.cmpf ogt, %45, %46 : vector<16x128xf32>
    %cst_31 = arith.constant 0.00999999977 : f32
    %48 = vector.broadcast %cst_31 : f32 to vector<16x128xf32>
    %49 = arith.mulf %48, %45 : vector<16x128xf32>
    %50 = arith.select %47, %45, %49 : vector<16x128xi1>, vector<16x128xf32>
    %51 = arith.truncf %50 : vector<16x128xf32> to vector<16x128xbf16>
    %c0_32 = arith.constant 0 : index
    %c0_33 = arith.constant 0 : index
    %52 = vector.load %arg12[%c0_32, %c0_33] : memref<128x128xbf16, #tpu.memory_space<vmem>>, vector<128x128xbf16>
    %cst_34 = arith.constant dense<0.000000e+00> : vector<16x128xf32>
    %53 = tpu.matmul %51, %52, %cst_34 {dimension_numbers = #tpu.dot_dimension_numbers<[1], [0], [0], [1], [0, 0, 1, 1], [], []>} : vector<16x128xbf16>, vector<128x128xbf16>, vector<16x128xf32> -> vector<16x128xf32>
    %c0_35 = arith.constant 0 : index
    %c0_36 = arith.constant 0 : index
    %54 = vector.load %arg13[%c0_35, %c0_36] : memref<1x128xf32, #tpu.memory_space<vmem>>, vector<1x128xf32>
    %55 = vector.broadcast %54 : vector<1x128xf32> to vector<16x128xf32>
    %56 = arith.addf %53, %55 : vector<16x128xf32>
    %cst_37 = arith.constant 0.000000e+00 : f32
    %57 = vector.broadcast %cst_37 : f32 to vector<16x128xf32>
    %58 = arith.cmpf ogt, %56, %57 : vector<16x128xf32>
    %cst_38 = arith.constant 0.00999999977 : f32
    %59 = vector.broadcast %cst_38 : f32 to vector<16x128xf32>
    %60 = arith.mulf %59, %56 : vector<16x128xf32>
    %61 = arith.select %58, %56, %60 : vector<16x128xi1>, vector<16x128xf32>
    %62 = arith.truncf %61 : vector<16x128xf32> to vector<16x128xbf16>
    %c0_39 = arith.constant 0 : index
    %c0_40 = arith.constant 0 : index
    %63 = vector.load %arg14[%c0_39, %c0_40] : memref<128x64xbf16, #tpu.memory_space<vmem>>, vector<128x64xbf16>
    %cst_41 = arith.constant dense<0.000000e+00> : vector<16x64xf32>
    %64 = tpu.matmul %62, %63, %cst_41 {dimension_numbers = #tpu.dot_dimension_numbers<[1], [0], [0], [1], [0, 0, 1, 1], [], []>} : vector<16x128xbf16>, vector<128x64xbf16>, vector<16x64xf32> -> vector<16x64xf32>
    %c0_42 = arith.constant 0 : index
    %c0_43 = arith.constant 0 : index
    %65 = vector.load %arg15[%c0_42, %c0_43] : memref<1x64xf32, #tpu.memory_space<vmem>>, vector<1x64xf32>
    %66 = vector.broadcast %65 : vector<1x64xf32> to vector<16x64xf32>
    %67 = arith.addf %64, %66 : vector<16x64xf32>
    %cst_44 = arith.constant 0.000000e+00 : f32
    %68 = vector.broadcast %cst_44 : f32 to vector<16x64xf32>
    %69 = arith.cmpf ogt, %67, %68 : vector<16x64xf32>
    %cst_45 = arith.constant 0.00999999977 : f32
    %70 = vector.broadcast %cst_45 : f32 to vector<16x64xf32>
    %71 = arith.mulf %70, %67 : vector<16x64xf32>
    %72 = arith.select %69, %67, %71 : vector<16x64xi1>, vector<16x64xf32>
    %73 = tpu.concatenate %72, %27 in 1 : vector<16x64xf32>, vector<16x64xf32> -> vector<16x128xf32>
    %c0_46 = arith.constant 0 : index
    %c0_47 = arith.constant 0 : index
    %74 = vector.load %arg16[%c0_46, %c0_47] : memref<16x128xf32, #tpu.memory_space<vmem>>, vector<16x128xf32>
    tpu.vector_store %arg16[%c0_46, %c0_47], %73 {strides = array<i32>} : memref<16x128xf32, #tpu.memory_space<vmem>>, vector<16x128xf32>,
    return
  }
  func.func @transform_0(%arg0: i32) -> (i32, i32) {
    %c0_i32 = arith.constant 0 : i32
    %c0_i32_0 = arith.constant 0 : i32
    return %arg0, %c0_i32 : i32, i32
  }
  func.func @transform_1(%arg0: i32) -> (i32, i32) {
    %c0_i32 = arith.constant 0 : i32
    %c0_i32_0 = arith.constant 0 : i32
    return %arg0, %c0_i32 : i32, i32
  }
  func.func @transform_2(%arg0: i32) -> (i32, i32) {
    %c0_i32 = arith.constant 0 : i32
    %c0_i32_0 = arith.constant 0 : i32
    %c0_i32_1 = arith.constant 0 : i32
    return %c0_i32, %c0_i32_0 : i32, i32
  }
  func.func @transform_3(%arg0: i32) -> (i32, i32) {
    %c0_i32 = arith.constant 0 : i32
    %c0_i32_0 = arith.constant 0 : i32
    %c0_i32_1 = arith.constant 0 : i32
    return %c0_i32, %c0_i32_0 : i32, i32
  }
  func.func @transform_4(%arg0: i32) -> (i32, i32) {
    %c0_i32 = arith.constant 0 : i32
    %c0_i32_0 = arith.constant 0 : i32
    %c0_i32_1 = arith.constant 0 : i32
    return %c0_i32, %c0_i32_0 : i32, i32
  }
  func.func @transform_5(%arg0: i32) -> (i32, i32) {
    %c0_i32 = arith.constant 0 : i32
    %c0_i32_0 = arith.constant 0 : i32
    %c0_i32_1 = arith.constant 0 : i32
    return %c0_i32, %c0_i32_0 : i32, i32
  }
  func.func @transform_6(%arg0: i32) -> (i32, i32) {
    %c0_i32 = arith.constant 0 : i32
    %c0_i32_0 = arith.constant 0 : i32
    %c0_i32_1 = arith.constant 0 : i32
    return %c0_i32, %c0_i32_0 : i32, i32
  }
  func.func @transform_7(%arg0: i32) -> (i32, i32) {
    %c0_i32 = arith.constant 0 : i32
    %c0_i32_0 = arith.constant 0 : i32
    %c0_i32_1 = arith.constant 0 : i32
    return %c0_i32, %c0_i32_0 : i32, i32
  }
  func.func @transform_8(%arg0: i32) -> (i32, i32) {
    %c0_i32 = arith.constant 0 : i32
    %c0_i32_0 = arith.constant 0 : i32
    %c0_i32_1 = arith.constant 0 : i32
    return %c0_i32, %c0_i32_0 : i32, i32
  }
  func.func @transform_9(%arg0: i32) -> (i32, i32) {
    %c0_i32 = arith.constant 0 : i32
    %c0_i32_0 = arith.constant 0 : i32
    %c0_i32_1 = arith.constant 0 : i32
    return %c0_i32, %c0_i32_0 : i32, i32
  }
  func.func @transform_10(%arg0: i32) -> (i32, i32) {
    %c0_i32 = arith.constant 0 : i32
    %c0_i32_0 = arith.constant 0 : i32
    %c0_i32_1 = arith.constant 0 : i32
    return %c0_i32, %c0_i32_0 : i32, i32
  }
  func.func @transform_11(%arg0: i32) -> (i32, i32) {
    %c0_i32 = arith.constant 0 : i32
    %c0_i32_0 = arith.constant 0 : i32
    %c0_i32_1 = arith.constant 0 : i32
    return %c0_i32, %c0_i32_0 : i32, i32
  }
  func.func @transform_12(%arg0: i32) -> (i32, i32) {
    %c0_i32 = arith.constant 0 : i32
    %c0_i32_0 = arith.constant 0 : i32
    %c0_i32_1 = arith.constant 0 : i32
    return %c0_i32, %c0_i32_0 : i32, i32
  }
  func.func @transform_13(%arg0: i32) -> (i32, i32) {
    %c0_i32 = arith.constant 0 : i32
    %c0_i32_0 = arith.constant 0 : i32
    %c0_i32_1 = arith.constant 0 : i32
    return %c0_i32, %c0_i32_0 : i32, i32
  }
  func.func @transform_14(%arg0: i32) -> (i32, i32) {
    %c0_i32 = arith.constant 0 : i32
    %c0_i32_0 = arith.constant 0 : i32
    %c0_i32_1 = arith.constant 0 : i32
    return %c0_i32, %c0_i32_0 : i32, i32
  }
  func.func @transform_15(%arg0: i32) -> (i32, i32) {
    %c0_i32 = arith.constant 0 : i32
    %c0_i32_0 = arith.constant 0 : i32
    return %arg0, %c0_i32 : i32, i32
  }
}

</mosaic_0001>

<bundles_post_ra>
// kernel: conditional_vae_forward.1
= control target key start
LH: loop header
LB: loop body
LE: loop exit
PB: predicated region body
PF: predicated region fallthrough
CT: control target
= control target key end

     0   :  { %vm105_vm0 = vcmask 1043456   ;;  %v1043_v0 = vmov 0.0   ;;  %vm1044_vm1 = vmmov 0   ;;  %vm101_vm2 = vcmask 588800   ;;  %s1343_s2 = inlined_call_operand.vmem [shape: bf16[72,128], index: 2, kind: input, shape index: {}]   ;;  %s1344_s4 = inlined_call_operand.vmem [shape: bf16[128,128], index: 4, kind: input, shape index: {}]   ;;  %s1345_s0 = inlined_call_operand.vmem [shape: bf16[16,72], index: 0, kind: input, shape index: {}]   ;;  %s1346_s6 = inlined_call_operand.vmem [shape: bf16[128,64], index: 6, kind: input, shape index: {}]   ;;  %s1347_s3 = inlined_call_operand.vmem [shape: f32[1,128], index: 3, kind: input, shape index: {}]   ;;  %s1348_s9 = inlined_call_operand.vmem [shape: bf16[8,128], index: 9, kind: input, shape index: {}]   ;;  %s1349_s5 = inlined_call_operand.vmem [shape: f32[1,128], index: 5, kind: input, shape index: {}]   ;;  %s1350_s7 = inlined_call_operand.vmem [shape: f32[1,64], index: 7, kind: input, shape index: {}]   ;;  %s1351_s8 = inlined_call_operand.vmem [shape: bf16[32,128], index: 8, kind: input, shape index: {}]   ;;  %s1352_s11 = inlined_call_operand.vmem [shape: bf16[128,128], index: 11, kind: input, shape index: {}]   ;;  %s1353_s1 = inlined_call_operand.vmem [shape: f32[16,32], index: 1, kind: input, shape index: {}]   ;;  %s1354_s13 = inlined_call_operand.vmem [shape: bf16[128,64], index: 13, kind: input, shape index: {}]   ;;  %s1355_s10 = inlined_call_operand.vmem [shape: f32[1,128], index: 10, kind: input, shape index: {}]   ;;  %s1356_s12 = inlined_call_operand.vmem [shape: f32[1,128], index: 12, kind: input, shape index: {}]   ;;  %s1357_s14 = inlined_call_operand.vmem [shape: f32[1,64], index: 14, kind: input, shape index: {}]   ;;  %s1358_s15 = inlined_call_operand.vmem [shape: f32[16,128], index: 15, kind: output, shape index: {}]  }
   0x1   :  { %887 = vmatprep.subr.bf16.mxu0 %v1043_v0  ;;  %v999_v1 = vld [vmem:[%s1343_s2 + $0x20] ss:$0 sps:$4 sm:$0xff]   ;;  %897 = vmatprep.mubr.msk.bf16.mxu0 %vm1044_vm1, %v1043_v0  ;;  %v1000_v3 = vld [vmem:[%s1343_s2 + $0x18] sm:$0xff]   ;;  %v1001_v5 = vld [vmem:[%s1343_s2 + $0x10] sm:$0xff]   ;;  %vm416_vm7 = vcmask 64512   ;;  %vm476_vm8 = vcmask 261120  }
   0x2   :  { %901 = vmatprep.subr.bf16.mxu1 %v1043_v0  ;;  %917 = vmatprep.mubr.msk.bf16.mxu1 %vm1044_vm1, %v1043_v0  ;;  %v107_v2 = vsel %vm105_vm0, %v999_v1, 0  ;;  %v1005_v4 = vld [vmem:[%s1344_s4 + $0x38] sm:$0xff]   ;;  %v1006_v6 = vld [vmem:[%s1344_s4 + $0x30] sm:$0xff]   ;;  %v1002_v7 = vld [vmem:[%s1343_s2 + $0x8] sm:$0xff]   ;;  %vm782_vm14 = vcmask 523264  }
   0x3   :  { %888 = vmatpush3.bf16.msra.mxu0 %v107_v2  ;;  %902 = vmatpush3.bf16.msra.mxu1 %v1005_v4  ;;  %v1007_v8 = vld [vmem:[%s1344_s4 + $0x28] sm:$0xff]   ;;  %v1003_v9 = vld [vmem:[%s1343_s2] sm:$0xff]   ;;  %v1009_v12 = vld [vmem:[%s1344_s4 + $0x18] sm:$0xff]  }
   0x4   :  { %889 = vmatprep.subr.bf16.mxu0 %v1043_v0  ;;  %903 = vmatprep.subr.bf16.mxu1 %v1043_v0  ;;  %v1008_v10 = vld [vmem:[%s1344_s4 + $0x20] sm:$0xff]   ;;  %v1010_v13 = vld [vmem:[%s1344_s4 + $0x10] sm:$0xff]   ;;  %v1011_v14 = vld [vmem:[%s1344_s4 + $0x8] sm:$0xff]  }
   0x5   :  { %v1171_v11 = vld [vmem:[%s1345_s0] sm:$0xff]   ;;  %v1013_v16 = vld [vmem:[%s1346_s6 + $0x38] sm:$0xff]   ;;  %v1014_v17 = vld [vmem:[%s1346_s6 + $0x30] sm:$0xff]  }
   0x6   :  { %v1012_v15 = vld [vmem:[%s1344_s4] sm:$0xff]   ;;  %v1015_v18 = vld [vmem:[%s1346_s6 + $0x28] sm:$0xff]   ;;  %v1017_v20 = vld [vmem:[%s1346_s6 + $0x18] sm:$0xff]   ;;  %s1046_s4 = smov 96  }
   0x7   :  { %890 = vmatpush3.bf16.msra.mxu0 %v1000_v3  ;;  %904 = vmatpush3.bf16.msra.mxu1 %v1006_v6  ;;  %v1016_v19 = vld [vmem:[%s1346_s6 + $0x20] sm:$0xff]   ;;  %v1018_v35 = vld [vmem:[%s1346_s6 + $0x10] sm:$0xff]   ;;  %v1019_v36 = vld [vmem:[%s1346_s6 + $0x8] sm:$0xff]  }
   0x8   :  { %891 = vmatprep.subr.bf16.mxu0 %v1043_v0  ;;  %905 = vmatprep.subr.bf16.mxu1 %v1043_v0  ;;  %v791_v21 = vld [vmem:[%s1347_s3] ss:$0 sm:$0xff]  ;;  %v1021_v62 = vld [vmem:[%s1351_s8 + $0x8] sm:$0xff]  }
   0x9   :  { %v413_v29 = vld [vmem:[%s1348_s9] sm:$0xf] }
   0xa   :  { %v421_v33 = vsel %vm105_vm0, %v413_v29, 0  ;;  %v1020_v37 = vld [vmem:[%s1346_s6] sm:$0xff]   ;;  %s1045_s6 = smov 64  }
   0xb   :  { %892 = vmatpush3.bf16.msra.mxu0 %v1001_v5  ;;  %906 = vmatpush3.bf16.msra.mxu1 %v1007_v8  ;;  %v799_v38 = vld [vmem:[%s1349_s5] ss:$0 sm:$0xff]  ;;  %v389_v5 = vld [vmem:[%s1353_s1 + $0x8] sm:$0xff] }
   0xc   :  { %893 = vmatprep.subr.bf16.mxu0 %v1043_v0  ;;  %907 = vmatprep.subr.bf16.mxu1 %v1043_v0  ;;  %v808_v50 = vld [vmem:[%s1350_s7] ss:$0 sm:$0xff] }
   0xd   :  { %414 = vrot.lane.b32.xlu0 %v1171_v11, %s1045_s6  ;;  %v1022_v63 = vld [vmem:[%s1351_s8] sm:$0xff]  }
   0xe   :  { %v388_v3 = vld [vmem:[%s1353_s1] sm:$0xff] }
   0xf   :  { %894 = vmatpush3.bf16.msra.mxu0 %v1002_v7  ;;  %908 = vmatpush3.bf16.msra.mxu1 %v1008_v10 }
  0x10   :  { %895 = vmatprep.subr.bf16.mxu0 %v1043_v0  ;;  %909 = vmatprep.subr.bf16.mxu1 %v1043_v0 }
  0x13   :  { %896 = vmatpush3.bf16.msra.mxu0 %v1003_v9  ;;  %910 = vmatpush3.bf16.msra.mxu1 %v1009_v12 }
  0x14   :  { %921 = vmatprep.subr.bf16.mxu0 %v1043_v0  ;;  %911 = vmatprep.subr.bf16.mxu1 %v1043_v0 }
  0x16   :  { %898 = vmatmul.mubr.msk.bf16.vlgmr.msra.gmra.mxu0 %vm101_vm2, %v1171_v11  ;;  %v1023_v11 = vld [vmem:[%s1352_s11 + $0x38] sm:$0xff]  }
  0x17   :  { %937 = vmatprep.mubr.msk.bf16.mxu0 %vm1044_vm1, %v1043_v0  ;;  %912 = vmatpush3.bf16.msra.mxu1 %v1010_v13  ;;  %v1024_v13 = vld [vmem:[%s1352_s11 + $0x30] sm:$0xff]  }
  0x18   :  { %913 = vmatprep.subr.bf16.mxu1 %v1043_v0  ;;  %922 = vmatpush3.bf16.msra.mxu0 %v1013_v16  ;;  %v1027_v16 = vld [vmem:[%s1352_s11 + $0x18] sm:$0xff]  }
  0x19   :  { %923 = vmatprep.subr.bf16.mxu0 %v1043_v0 }
  0x1b   :  { %914 = vmatpush3.bf16.msra.mxu1 %v1011_v14  ;;  %v1025_v14 = vld [vmem:[%s1352_s11 + $0x28] sm:$0xff]  }
  0x1c   :  { %915 = vmatprep.subr.bf16.mxu1 %v1043_v0  ;;  %924 = vmatpush3.bf16.msra.mxu0 %v1014_v17 }
  0x1d   :  { %925 = vmatprep.subr.bf16.mxu0 %v1043_v0 }
  0x1f   :  { %916 = vmatpush3.bf16.msra.mxu1 %v1012_v15  ;;  %v1026_v15 = vld [vmem:[%s1352_s11 + $0x20] sm:$0xff]  }
  0x20   :  { %941 = vmatprep.subr.bf16.mxu1 %v1043_v0  ;;  %926 = vmatpush3.bf16.msra.mxu0 %v1015_v18 }
  0x21   :  { %927 = vmatprep.subr.bf16.mxu0 %v1043_v0 }
  0x24   :  { %928 = vmatpush3.bf16.msra.mxu0 %v1016_v19 }
  0x25   :  { %929 = vmatprep.subr.bf16.mxu0 %v1043_v0 }
  0x28   :  { %930 = vmatpush3.bf16.msra.mxu0 %v1017_v20 }
  0x29   :  { %931 = vmatprep.subr.bf16.mxu0 %v1043_v0 }
  0x2c   :  { %932 = vmatpush3.bf16.msra.mxu0 %v1018_v35 }
  0x2d   :  { %933 = vmatprep.subr.bf16.mxu0 %v1043_v0 }
  0x30   :  { %934 = vmatpush3.bf16.msra.mxu0 %v1019_v36 }
  0x31   :  { %935 = vmatprep.subr.bf16.mxu0 %v1043_v0 }
  0x34   :  { %936 = vmatpush3.bf16.msra.mxu0 %v1020_v37 }
  0x35   :  { %975 = vmatprep.subr.bf16.mxu0 %v1043_v0 }
  0x7f   :  { %v415_v51 = vpop.permute.xlu0 %414 }
  0xd6   :  { %v143_v22 = vpop.f32.mrf.mxu0 }
  0xd7   :  { %v144_v23 = vadd.f32 %v791_v21, %v143_v22  ;;  %v1029_v22 = vld [vmem:[%s1352_s11 + $0x8] sm:$0xff]  }
  0xd8   :  { %v899_v24 = vpop.f32.mrf.mxu0 }
  0xd9   :  { %v152_v26 = vmul.f32 0.01, %v144_v23  ;;  %vm150_vm3 = vcmp.gt.f32.partialorder %v144_v23, 0.0  ;;  %v1031_v24 = vld [vmem:[%s1354_s13 + $0x38] sm:$0xff]  }
  0xda   :  { %v146_v25 = vpop.f32.mrf.mxu0 }
  0xdb   :  { %v147_v27 = vadd.f32 %v791_v21, %v146_v25  ;;  %v154_v31 = vsel %vm150_vm3, %v144_v23, %v152_v26  ;;  %v1028_v21 = vld [vmem:[%s1352_s11 + $0x10] sm:$0xff]   ;;  %v1030_v23 = vld [vmem:[%s1352_s11] sm:$0xff]   ;;  %v1033_v26 = vld [vmem:[%s1354_s13 + $0x28] sm:$0xff]  }
  0xdc   :  { %v900_v28 = vpop.f32.mrf.mxu0  ;;  %v1032_v25 = vld [vmem:[%s1354_s13 + $0x30] sm:$0xff]  }
  0xdd   :  { %vm151_vm4 = vcmp.gt.f32.partialorder %v147_v27, 0.0  ;;  %v153_v30 = vmul.f32 0.01, %v147_v27  ;;  %v1035_v28 = vld [vmem:[%s1354_s13 + $0x18] sm:$0xff]  }
  0xdf   :  { %v155_v32 = vsel %vm151_vm4, %v147_v27, %v153_v30  ;;  %v1034_v27 = vld [vmem:[%s1354_s13 + $0x20] sm:$0xff]  }
  0xe0   :  { %v156_v34 = vpack.c.bf16 %v155_v32, %v154_v31  ;;  %v821_v30 = vld [vmem:[%s1355_s10] ss:$0 sm:$0xff] }
  0xe2   :  { %918 = vmatmul.mubr.bf16.vlgmr.msra.gmra.mxu1 %v156_v34 }
  0xe3   :  { %942 = vmatpush3.bf16.msra.mxu1 %v421_v33  ;;  %943 = vmatprep.mubr.msk.bf16.mxu1 %vm1044_vm1, %v1043_v0 }
  0xe4   :  { %947 = vmatprep.subr.bf16.mxu1 %v1043_v0 }
  0xea   :  { %944 = vmatmul.mubr.msk.bf16.vlgmr.msra.gmra.mxu1 %vm416_vm7, %v415_v51 }
  0xeb   :  { %951 = vmatprep.mubr.msk.bf16.mxu1 %vm1044_vm1, %v1043_v0  ;;  %948 = vmatpush3.bf16.msra.mxu1 %v1021_v62 }
  0xec   :  { %949 = vmatprep.subr.bf16.mxu1 %v1043_v0 }
  0xef   :  { %950 = vmatpush3.bf16.msra.mxu1 %v1022_v63 }
  0xf0   :  { %955 = vmatprep.subr.bf16.mxu1 %v1043_v0 }
 0x1a2   :  { %v262_v39 = vpop.f32.mrf.mxu1 }
 0x1a3   :  { %v263_v40 = vadd.f32 %v799_v38, %v262_v39 }
 0x1a4   :  { %v919_v41 = vpop.f32.mrf.mxu1 }
 0x1a5   :  { %v271_v43 = vmul.f32 0.01, %v263_v40  ;;  %vm269_vm5 = vcmp.gt.f32.partialorder %v263_v40, 0.0 }
 0x1a6   :  { %v265_v42 = vpop.f32.mrf.mxu1 }
 0x1a7   :  { %v266_v44 = vadd.f32 %v799_v38, %v265_v42  ;;  %v273_v47 = vsel %vm269_vm5, %v263_v40, %v271_v43  ;;  %v1036_v43 = vld [vmem:[%s1354_s13 + $0x10] sm:$0xff]  }
 0x1a8   :  { %v920_v45 = vpop.f32.mrf.mxu1 }
 0x1a9   :  { %vm270_vm6 = vcmp.gt.f32.partialorder %v266_v44, 0.0  ;;  %v272_v46 = vmul.f32 0.01, %v266_v44  ;;  %v1038_v45 = vld [vmem:[%s1354_s13] sm:$0xff]  }
 0x1aa   :  { %v457_v17 = vpop.f32.mrf.mxu1 }
 0x1ab   :  { %v274_v48 = vsel %vm270_vm6, %v266_v44, %v272_v46  ;;  %v1037_v44 = vld [vmem:[%s1354_s13 + $0x8] sm:$0xff]   ;;  %v822_v46 = vld [vmem:[%s1356_s12] ss:$0 sm:$0xff] }
 0x1ac   :  { %v275_v49 = vpack.c.bf16 %v274_v48, %v273_v47  ;;  %v945_v18 = vpop.f32.mrf.mxu1 }
 0x1ae   :  { %938 = vmatmul.mubr.bf16.vlgmr.msra.gmra.mxu0 %v275_v49  ;;  %v460_v19 = vpop.f32.mrf.mxu1 }
 0x1af   :  { %991 = vmatprep.mubr.msk.bf16.mxu0 %vm1044_vm1, %v1043_v0  ;;  %976 = vmatpush3.bf16.msra.mxu0 %v1031_v24 }
 0x1b0   :  { %v946_v20 = vpop.f32.mrf.mxu1  ;;  %977 = vmatprep.subr.bf16.mxu0 %v1043_v0 }
 0x1b3   :  { %978 = vmatpush3.bf16.msra.mxu0 %v1032_v25 }
 0x1b4   :  { %979 = vmatprep.subr.bf16.mxu0 %v1043_v0 }
 0x1b7   :  { %980 = vmatpush3.bf16.msra.mxu0 %v1033_v26 }
 0x1b8   :  { %981 = vmatprep.subr.bf16.mxu0 %v1043_v0 }
 0x1bb   :  { %982 = vmatpush3.bf16.msra.mxu0 %v1034_v27 }
 0x1bc   :  { %983 = vmatprep.subr.bf16.mxu0 %v1043_v0 }
 0x1bf   :  { %984 = vmatpush3.bf16.msra.mxu0 %v1035_v28 }
 0x1c0   :  { %985 = vmatprep.subr.bf16.mxu0 %v1043_v0 }
 0x1c3   :  { %986 = vmatpush3.bf16.msra.mxu0 %v1036_v43 }
 0x1c4   :  { %987 = vmatprep.subr.bf16.mxu0 %v1043_v0 }
 0x1c7   :  { %988 = vmatpush3.bf16.msra.mxu0 %v1037_v44 }
 0x1c8   :  { %989 = vmatprep.subr.bf16.mxu0 %v1043_v0 }
 0x1cb   :  { %990 = vmatpush3.bf16.msra.mxu0 %v1038_v45 }
 0x26e   :  { %v381_v52 = vpop.f32.mrf.mxu0 }
 0x26f   :  { %v382_v53 = vadd.f32 %v808_v50, %v381_v52 }
 0x270   :  { %v939_v54 = vpop.f32.mrf.mxu0 }
 0x271   :  { %v390_v55 = vmul.f32 0.5, %v382_v53 }
 0x272   :  { %v384_v56 = vpop.f32.mrf.mxu0 }
 0x273   :  { %v392_v57 = vmul.f32 1.442695, %v390_v55  ;;  %v385_v58 = vadd.f32 %v808_v50, %v384_v56 }
 0x274   :  { %v940_v59 = vpop.f32.mrf.mxu0 }
 0x275   :  { %1039 = vpow2.f32 %v392_v57  ;;  %v391_v60 = vmul.f32 0.5, %v385_v58  ;;  %v831_v57 = vld [vmem:[%s1357_s14] ss:$0 sm:$0xff] }
 0x277   :  { %v394_v61 = vmul.f32 1.442695, %v391_v60 }
 0x279   :  { %1041 = vpow2.f32 %v394_v61 }
 0x282   :  { %v1040_v1 = vpop.eup %1039 }
 0x283   :  { %398 = vrot.lane.b32.xlu0 %v1040_v1, %s1046_s4 }
 0x286   :  { %v1042_v2 = vpop.eup %1041 }
 0x287   :  { %778 = vrot.lane.b32.xlu0 %v385_v58, %s1045_s6  ;;  %400 = vrot.lane.b32.xlu1 %v1042_v2, %s1046_s4 }
 0x28b   :  { %776 = vrot.lane.b32.xlu1 %v382_v53, %s1045_s6 }
 0x2f5   :  { %v399_v4 = vpop.permute.xlu0 %398 }
 0x2f6   :  { %v404_v6 = vmul.f32 %v399_v4, %v388_v3 }
 0x2f8   :  { %v406_v9 = vadd.f32 %v404_v6, %v382_v53 }
 0x2f9   :  { %v401_v7 = vpop.permute.xlu1 %400  ;;  %v779_v6 = vpop.permute.xlu0 %778 }
 0x2fa   :  { %v405_v8 = vmul.f32 %v401_v7, %v389_v5 }
 0x2fc   :  { %v407_v10 = vadd.f32 %v405_v8, %v385_v58 }
 0x2fd   :  { %v777_v63 = vpop.permute.xlu1 %776 }
 0x2fe   :  { %v408_v12 = vpack.c.bf16 %v407_v10, %v406_v9 }
 0x300   :  { %952 = vmatmul.mubr.msk.bf16.vlgmr.msra.gmra.mxu1 %vm476_vm8, %v408_v12 }
 0x301   :  { %956 = vmatpush3.bf16.msra.mxu1 %v1023_v11  ;;  %971 = vmatprep.mubr.msk.bf16.mxu1 %vm1044_vm1, %v1043_v0 }
 0x302   :  { %957 = vmatprep.subr.bf16.mxu1 %v1043_v0 }
 0x305   :  { %958 = vmatpush3.bf16.msra.mxu1 %v1024_v13 }
 0x306   :  { %959 = vmatprep.subr.bf16.mxu1 %v1043_v0 }
 0x309   :  { %960 = vmatpush3.bf16.msra.mxu1 %v1025_v14 }
 0x30a   :  { %961 = vmatprep.subr.bf16.mxu1 %v1043_v0 }
 0x30d   :  { %962 = vmatpush3.bf16.msra.mxu1 %v1026_v15 }
 0x30e   :  { %963 = vmatprep.subr.bf16.mxu1 %v1043_v0 }
 0x311   :  { %964 = vmatpush3.bf16.msra.mxu1 %v1027_v16 }
 0x312   :  { %965 = vmatprep.subr.bf16.mxu1 %v1043_v0 }
 0x315   :  { %966 = vmatpush3.bf16.msra.mxu1 %v1028_v21 }
 0x316   :  { %967 = vmatprep.subr.bf16.mxu1 %v1043_v0 }
 0x319   :  { %968 = vmatpush3.bf16.msra.mxu1 %v1029_v22 }
 0x31a   :  { %969 = vmatprep.subr.bf16.mxu1 %v1043_v0 }
 0x31d   :  { %970 = vmatpush3.bf16.msra.mxu1 %v1030_v23 }
 0x3c0   :  { %v514_v29 = vpop.f32.mrf.mxu1 }
 0x3c1   :  { %v515_v31 = vadd.f32 %v514_v29, %v457_v17 }
 0x3c2   :  { %v953_v32 = vpop.f32.mrf.mxu1 }
 0x3c3   :  { %v528_v33 = vadd.f32 %v821_v30, %v515_v31 }
 0x3c4   :  { %v517_v34 = vpop.f32.mrf.mxu1 }
 0x3c5   :  { %v518_v35 = vadd.f32 %v517_v34, %v460_v19  ;;  %v532_v37 = vmul.f32 0.01, %v528_v33  ;;  %vm530_vm9 = vcmp.gt.f32.partialorder %v528_v33, 0.0 }
 0x3c6   :  { %v954_v36 = vpop.f32.mrf.mxu1 }
 0x3c7   :  { %v529_v38 = vadd.f32 %v821_v30, %v518_v35  ;;  %v534_v40 = vsel %vm530_vm9, %v528_v33, %v532_v37 }
 0x3c9   :  { %vm531_vm10 = vcmp.gt.f32.partialorder %v529_v38, 0.0  ;;  %v533_v39 = vmul.f32 0.01, %v529_v38 }
 0x3cb   :  { %v535_v41 = vsel %vm531_vm10, %v529_v38, %v533_v39 }
 0x3cc   :  { %v536_v42 = vpack.c.bf16 %v535_v41, %v534_v40 }
 0x3ce   :  { %972 = vmatmul.mubr.bf16.vlgmr.msra.gmra.mxu1 %v536_v42 }
 0x48e   :  { %v642_v47 = vpop.f32.mrf.mxu1 }
 0x48f   :  { %v643_v48 = vadd.f32 %v822_v46, %v642_v47 }
 0x490   :  { %v973_v49 = vpop.f32.mrf.mxu1 }
 0x491   :  { %v651_v51 = vmul.f32 0.01, %v643_v48  ;;  %vm649_vm11 = vcmp.gt.f32.partialorder %v643_v48, 0.0 }
 0x492   :  { %v645_v50 = vpop.f32.mrf.mxu1 }
 0x493   :  { %v646_v52 = vadd.f32 %v822_v46, %v645_v50  ;;  %v653_v0 = vsel %vm649_vm11, %v643_v48, %v651_v51 }
 0x494   :  { %v974_v53 = vpop.f32.mrf.mxu1 }
 0x495   :  { %vm650_vm12 = vcmp.gt.f32.partialorder %v646_v52, 0.0  ;;  %v652_v54 = vmul.f32 0.01, %v646_v52 }
 0x497   :  { %v654_v55 = vsel %vm650_vm12, %v646_v52, %v652_v54 }
 0x498   :  { %v655_v56 = vpack.c.bf16 %v654_v55, %v653_v0 }
 0x49a   :  { %992 = vmatmul.mubr.bf16.vlgmr.msra.gmra.mxu0 %v655_v56 }
 0x55a   :  { %v761_v58 = vpop.f32.mrf.mxu0 }
 0x55b   :  { %v762_v59 = vadd.f32 %v831_v57, %v761_v58 }
 0x55c   :  { %v993_v60 = vpop.f32.mrf.mxu0 }
 0x55d   :  { %vm768_vm13 = vcmp.gt.f32.partialorder %v762_v59, 0.0  ;;  %v770_v61 = vmul.f32 0.01, %v762_v59 }
 0x55e   :  { %v764_v62 = vpop.f32.mrf.mxu0 }
 0x55f   :  { %v772_v1 = vsel %vm768_vm13, %v762_v59, %v770_v61  ;;  %v765_v2 = vadd.f32 %v831_v57, %v764_v62 }
 0x560   :  { %v783_v3 = vsel %vm782_vm14, %v772_v1, %v777_v63  ;;  %v994_v4 = vpop.f32.mrf.mxu0 }
 0x561   :  { %785 = vst [vmem:[%s1358_s15] sm:$0xff] %v783_v3  ;;  %vm769_vm15 = vcmp.gt.f32.partialorder %v765_v2, 0.0  ;;  %v771_v5 = vmul.f32 0.01, %v765_v2 }
 0x563   :  { %v773_v7 = vsel %vm769_vm15, %v765_v2, %v771_v5 }
 0x564   :  { %v784_v8 = vsel %vm782_vm14, %v773_v7, %v779_v6 }
 0x565   :  { %786 = vst [vmem:[%s1358_s15 + $0x8] sm:$0xff] %v784_v8 }

</bundles_post_ra>
